<compile_context>
chip_gen: v6e
topology: v6e:2x2x1
jax: 0.10.0
libtpu: 0.0.40
codegen_flags: <defaults>
</compile_context>

<pallas_src>
import functools
import math

import jax
import jax.numpy as jnp
from jax import lax
from jax.experimental import pallas as pl
from jax.experimental.pallas import tpu as pltpu


def _mha_kernel(xq_ref, xkv_ref, wqkv_ref, wo_ref, out_ref, att_ref, acc_ref,
                *, scale):
    # xq_ref:   (1, TQ, E)        query tile of x
    # xkv_ref:  (1, S,  E)        full sequence of x (for K / V)
    # wqkv_ref: (1, 3, hs, E)     head-major [Wq_h; Wk_h; Wv_h], lane-dense
    # wo_ref:   (1, hs, E)        head-major rows of the output projection
    # out_ref:  (1, TQ, E)        accumulated over the head grid axis
    # att_ref:  (1, 1, TQ, S)     attention weights for this (b, h, q-tile)
    # acc_ref:  (TQ, E) f32       VMEM accumulator scratch
    h = pl.program_id(2)

    xq = xq_ref[0]        # (TQ, E)
    xkv = xkv_ref[0]      # (S, E)
    wq_h = wqkv_ref[0, 0]  # (hs, E)
    wk_h = wqkv_ref[0, 1]  # (hs, E)
    wv_h = wqkv_ref[0, 2]  # (hs, E)
    wo_h = wo_ref[0]       # (hs, E)

    # Contract the lane-dense embedding axes directly (no explicit transpose).
    dn = (((1,), (1,)), ((), ()))
    q = lax.dot_general(xq, wq_h, dn, preferred_element_type=jnp.float32)   # (TQ, hs)
    k = lax.dot_general(xkv, wk_h, dn, preferred_element_type=jnp.float32)  # (S, hs)
    v = lax.dot_general(xkv, wv_h, dn, preferred_element_type=jnp.float32)  # (S, hs)

    # Scores: q @ k^T via contraction of the head dims (again no .T copy).
    s = lax.dot_general(q, k, dn, preferred_element_type=jnp.float32) * scale  # (TQ, S)
    s = s - jnp.max(s, axis=-1, keepdims=True)                                 # stable softmax
    e = jnp.exp(s)
    a = e * pl.reciprocal(jnp.sum(e, axis=-1, keepdims=True), approx=False)
    # TODO(synk): dropout on `a` skipped — the reference module references an
    # undefined self.dropout; treated as identity (eval mode).

    att_ref[0, 0] = a.astype(att_ref.dtype)

    ctx = jnp.dot(a, v, preferred_element_type=jnp.float32)                    # (TQ, hs)

    @pl.when(h == 0)
    def _():
        acc_ref[...] = jnp.zeros_like(acc_ref)

    # Output projection decomposes over heads:
    #   out = concat_h(ctx_h) @ Wo^T = sum_h ctx_h @ Wo^T[h*hs:(h+1)*hs, :]
    acc_ref[...] += jnp.dot(ctx, wo_h.astype(jnp.float32),
                            preferred_element_type=jnp.float32)                # (TQ, E)

    @pl.when(h == pl.num_programs(2) - 1)
    def _():
        out_ref[0] = acc_ref[...].astype(out_ref.dtype)


def multi_head_att(x, wq_t, wk_t, wv_t, wo_t, *, n_heads,
                   att_dtype=jnp.float32):
    """x: (B, S, E); w*_t: (E, E) pre-transposed nn.Linear weights (y = x @ w_t).

    Returns (out, att): out (B, S, E) in x.dtype, att (B, n_heads, S, S).
    `att_dtype` can be set to jnp.bfloat16 to halve the attention-weights
    writeback bytes when exactness of `att` is not required.
    """
    B, S, E = x.shape
    assert E % n_heads == 0
    hs = E // n_heads

    # Head-major, lane-dense weight layouts:
    #   wq_heads[h] == wq_t[:, h*hs:(h+1)*hs].T  -> (hs, E)   (same for k, v)
    #   wo_heads[h] == wo_t[h*hs:(h+1)*hs, :]    -> (hs, E)
    wq_heads = wq_t.T.reshape(n_heads, hs, E)
    wk_heads = wk_t.T.reshape(n_heads, hs, E)
    wv_heads = wv_t.T.reshape(n_heads, hs, E)
    w_qkv_heads = jnp.stack([wq_heads, wk_heads, wv_heads], axis=1)  # (H, 3, hs, E)
    wo_heads = wo_t.reshape(n_heads, hs, E)                          # (H, hs, E)

    # Query-tile size: full S when small, otherwise 128 (lane/sublane friendly).
    TQ = S if S <= 128 else 128
    assert S % TQ == 0, "S must be <= 128 or a multiple of 128"
    nq = S // TQ

    # Explicit (but hardware-capped) VMEM budget so larger tiles can
    # double-buffer on 128 MiB parts without tripping smaller ones.
    try:
        cap = pltpu.get_tpu_info().vmem_capacity_bytes
        vmem_limit = min(64 * 1024 * 1024, int(cap * 3 // 4))
    except Exception:  # pragma: no cover - fall back to compiler default
        vmem_limit = None

    kernel = functools.partial(_mha_kernel, scale=float(hs) ** -0.5)

    out, att = pl.pallas_call(
        kernel,
        out_shape=(
            jax.ShapeDtypeStruct((B, S, E), x.dtype),
            jax.ShapeDtypeStruct((B, n_heads, S, S), att_dtype),
        ),
        grid_spec=pltpu.PrefetchScalarGridSpec(
            num_scalar_prefetch=0,
            grid=(B, nq, n_heads),
            in_specs=[
                pl.BlockSpec((1, TQ, E), lambda b, qi, h: (b, qi, 0)),     # x (q tile)
                pl.BlockSpec((1, S, E), lambda b, qi, h: (b, 0, 0)),       # x (full, K/V)
                pl.BlockSpec((1, 3, hs, E), lambda b, qi, h: (h, 0, 0, 0)),  # fused QKV weights
                pl.BlockSpec((1, hs, E), lambda b, qi, h: (h, 0, 0)),      # Wo rows
            ],
            out_specs=[
                pl.BlockSpec((1, TQ, E), lambda b, qi, h: (b, qi, 0)),     # out (accum over h)
                pl.BlockSpec((1, 1, TQ, S), lambda b, qi, h: (b, h, qi, 0)),  # att tile
            ],
            scratch_shapes=[pltpu.VMEM((TQ, E), jnp.float32)],
        ),
        compiler_params=pltpu.CompilerParams(
            dimension_semantics=("parallel", "parallel", "arbitrary"),
            vmem_limit_bytes=vmem_limit,
        ),
    )(x, x, w_qkv_heads, wo_heads)
    return out, att


def _reference(x, wq_t, wk_t, wv_t, wo_t, n_heads):
    """Plain-JAX mirror of the PyTorch forward, for a correctness check."""
    B, S, E = x.shape
    hs = E // n_heads
    q = (x @ wq_t).reshape(B, S, n_heads, hs).transpose(0, 2, 1, 3)
    k = (x @ wk_t).reshape(B, S, n_heads, hs).transpose(0, 2, 1, 3)
    v = (x @ wv_t).reshape(B, S, n_heads, hs).transpose(0, 2, 1, 3)
    att = jnp.einsum('bhqd,bhkd->bhqk', q, k) * (hs ** -0.5)
    att = jax.nn.softmax(att, axis=-1)
    ctx = jnp.einsum('bhqk,bhkd->bhqd', att, v)
    ctx = ctx.transpose(0, 2, 1, 3).reshape(B, S, E)
    return ctx @ wo_t, att


if __name__ == "__main__":
    B, S, E = 2, 8, 32
    n_heads = 4

    key = jax.random.PRNGKey(0)
    kx, kq, kk, kv, ko = jax.random.split(key, 5)

    x = jax.random.normal(kx, (B, S, E), dtype=jnp.float32)
    # nn.Linear(E, E, bias=False) weight is (E_out, E_in); store transposed.
    scale = 1.0 / math.sqrt(E)
    wq_t = jax.random.uniform(kq, (E, E), jnp.float32, -scale, scale).T
    wk_t = jax.random.uniform(kk, (E, E), jnp.float32, -scale, scale).T
    wv_t = jax.random.uniform(kv, (E, E), jnp.float32, -scale, scale).T
    wo_t = jax.random.uniform(ko, (E, E), jnp.float32, -scale, scale).T

    out, att = multi_head_att(x, wq_t, wk_t, wv_t, wo_t, n_heads=n_heads)
    jax.block_until_ready((out, att))

    ref_out, ref_att = _reference(x, wq_t, wk_t, wv_t, wo_t, n_heads)
    assert jnp.allclose(out, ref_out, atol=1e-5, rtol=1e-5)
    assert jnp.allclose(att, ref_att, atol=1e-5, rtol=1e-5)

    print("KERNEL_OK")
</pallas_src>

<mosaic_0001>
module attributes {stable_mosaic.version = 11 : i64} {
  func.func @_mha_kernel(%arg0: i32, %arg1: i32, %arg2: i32, %arg3: memref<1x8x32xf32, #tpu.memory_space<vmem>>, %arg4: memref<1x8x32xf32, #tpu.memory_space<vmem>>, %arg5: memref<1x3x8x32xf32, #tpu.memory_space<vmem>>, %arg6: memref<1x8x32xf32, #tpu.memory_space<vmem>>, %arg7: memref<1x8x32xf32, #tpu.memory_space<vmem>>, %arg8: memref<1x1x8x8xf32, #tpu.memory_space<vmem>>, %arg9: memref<8x32xf32, #tpu.memory_space<vmem>>) attributes {dimension_semantics = [#tpu.dimension_semantics<parallel>, #tpu.dimension_semantics<parallel>, #tpu.dimension_semantics<arbitrary>], iteration_bounds = array<i64: 2, 1, 4>, scalar_prefetch = 0 : i64, scratch_operands = 1 : i64, tpu.core_type = #tpu.core_type<tc>, window_params = [{transform_indices = @transform_0, window_bounds = array<i64: 1, 8, 32>}, {transform_indices = @transform_1, window_bounds = array<i64: 1, 8, 32>}, {transform_indices = @transform_2, window_bounds = array<i64: 1, 3, 8, 32>}, {transform_indices = @transform_3, window_bounds = array<i64: 1, 8, 32>}, {transform_indices = @transform_4, window_bounds = array<i64: 1, 8, 32>}, {transform_indices = @transform_5, window_bounds = array<i64: 1, 1, 8, 8>}]} {
    %c0 = arith.constant 0 : index
    %c0_0 = arith.constant 0 : index
    %c0_1 = arith.constant 0 : index
    %0 = vector.load %arg3[%c0, %c0_0, %c0_1] : memref<1x8x32xf32, #tpu.memory_space<vmem>>, vector<1x8x32xf32>
    %1 = vector.shape_cast %0 : vector<1x8x32xf32> to vector<8x32xf32>
    %c0_2 = arith.constant 0 : index
    %c0_3 = arith.constant 0 : index
    %c0_4 = arith.constant 0 : index
    %2 = vector.load %arg4[%c0_2, %c0_3, %c0_4] : memref<1x8x32xf32, #tpu.memory_space<vmem>>, vector<1x8x32xf32>
    %3 = vector.shape_cast %2 : vector<1x8x32xf32> to vector<8x32xf32>
    %c0_5 = arith.constant 0 : index
    %c0_6 = arith.constant 0 : index
    %c0_7 = arith.constant 0 : index
    %c0_8 = arith.constant 0 : index
    %4 = vector.load %arg5[%c0_5, %c0_6, %c0_7, %c0_8] : memref<1x3x8x32xf32, #tpu.memory_space<vmem>>, vector<1x1x8x32xf32>
    %5 = vector.shape_cast %4 : vector<1x1x8x32xf32> to vector<8x32xf32>
    %c0_9 = arith.constant 0 : index
    %c1 = arith.constant 1 : index
    %c0_10 = arith.constant 0 : index
    %c0_11 = arith.constant 0 : index
    %6 = vector.load %arg5[%c0_9, %c1, %c0_10, %c0_11] : memref<1x3x8x32xf32, #tpu.memory_space<vmem>>, vector<1x1x8x32xf32>
    %7 = vector.shape_cast %6 : vector<1x1x8x32xf32> to vector<8x32xf32>
    %c0_12 = arith.constant 0 : index
    %c2 = arith.constant 2 : index
    %c0_13 = arith.constant 0 : index
    %c0_14 = arith.constant 0 : index
    %8 = vector.load %arg5[%c0_12, %c2, %c0_13, %c0_14] : memref<1x3x8x32xf32, #tpu.memory_space<vmem>>, vector<1x1x8x32xf32>
    %9 = vector.shape_cast %8 : vector<1x1x8x32xf32> to vector<8x32xf32>
    %c0_15 = arith.constant 0 : index
    %c0_16 = arith.constant 0 : index
    %c0_17 = arith.constant 0 : index
    %10 = vector.load %arg6[%c0_15, %c0_16, %c0_17] : memref<1x8x32xf32, #tpu.memory_space<vmem>>, vector<1x8x32xf32>
    %11 = vector.shape_cast %10 : vector<1x8x32xf32> to vector<8x32xf32>
    %cst = arith.constant dense<0.000000e+00> : vector<8x8xf32>
    %12 = tpu.matmul %1, %5, %cst {dimension_numbers = #tpu.dot_dimension_numbers<[1], [1], [0], [0], [0, 0, 1, 0], [], []>} : vector<8x32xf32>, vector<8x32xf32>, vector<8x8xf32> -> vector<8x8xf32>
    %cst_18 = arith.constant dense<0.000000e+00> : vector<8x8xf32>
    %13 = tpu.matmul %3, %7, %cst_18 {dimension_numbers = #tpu.dot_dimension_numbers<[1], [1], [0], [0], [0, 0, 1, 0], [], []>} : vector<8x32xf32>, vector<8x32xf32>, vector<8x8xf32> -> vector<8x8xf32>
    %cst_19 = arith.constant dense<0.000000e+00> : vector<8x8xf32>
    %14 = tpu.matmul %3, %9, %cst_19 {dimension_numbers = #tpu.dot_dimension_numbers<[1], [1], [0], [0], [0, 0, 1, 0], [], []>} : vector<8x32xf32>, vector<8x32xf32>, vector<8x8xf32> -> vector<8x8xf32>
    %cst_20 = arith.constant dense<0.000000e+00> : vector<8x8xf32>
    %15 = tpu.matmul %12, %13, %cst_20 {dimension_numbers = #tpu.dot_dimension_numbers<[1], [1], [0], [0], [0, 0, 1, 0], [], []>} : vector<8x8xf32>, vector<8x8xf32>, vector<8x8xf32> -> vector<8x8xf32>
    %cst_21 = arith.constant 0.353553385 : f32
    %16 = vector.broadcast %cst_21 : f32 to vector<8x8xf32>
    %17 = arith.mulf %15, %16 : vector<8x8xf32>
    %cst_22 = arith.constant dense<0xFF800000> : vector<8xf32>
    %18 = vector.multi_reduction <maximumf>, %17, %cst_22 [1] : vector<8x8xf32> to vector<8xf32>
    %19 = vector.shape_cast %18 : vector<8xf32> to vector<8x1xf32>
    %20 = vector.broadcast %19 : vector<8x1xf32> to vector<8x8xf32>
    %21 = arith.subf %17, %20 : vector<8x8xf32>
    %22 = math.exp %21 : vector<8x8xf32>
    %cst_23 = arith.constant dense<0.000000e+00> : vector<8xf32>
    %23 = vector.multi_reduction <add>, %22, %cst_23 [1] : vector<8x8xf32> to vector<8xf32>
    %24 = vector.shape_cast %23 : vector<8xf32> to vector<8x1xf32>
    %25 = tpu.reciprocal %24 : vector<8x1xf32> -> vector<8x1xf32>
    %26 = vector.broadcast %25 : vector<8x1xf32> to vector<8x8xf32>
    %27 = arith.mulf %22, %26 : vector<8x8xf32>
    %c0_24 = arith.constant 0 : index
    %c0_25 = arith.constant 0 : index
    %c0_26 = arith.constant 0 : index
    %c0_27 = arith.constant 0 : index
    %28 = vector.load %arg8[%c0_24, %c0_25, %c0_26, %c0_27] : memref<1x1x8x8xf32, #tpu.memory_space<vmem>>, vector<1x1x8x8xf32>
    %29 = vector.shape_cast %28 : vector<1x1x8x8xf32> to vector<8x8xf32>
    %30 = vector.shape_cast %27 : vector<8x8xf32> to vector<1x1x8x8xf32>
    tpu.vector_store %arg8[%c0_24, %c0_25, %c0_26, %c0_27], %30 {strides = array<i32>} : memref<1x1x8x8xf32, #tpu.memory_space<vmem>>, vector<1x1x8x8xf32>,
    %cst_28 = arith.constant dense<0.000000e+00> : vector<8x8xf32>
    %31 = tpu.matmul %27, %14, %cst_28 {dimension_numbers = #tpu.dot_dimension_numbers<[1], [0], [0], [1], [0, 0, 1, 1], [], []>} : vector<8x8xf32>, vector<8x8xf32>, vector<8x8xf32> -> vector<8x8xf32>
    %c0_i32 = arith.constant 0 : i32
    %32 = arith.cmpi eq, %arg2, %c0_i32 : i32
    %33 = arith.extui %32 : i1 to i32
    %c0_i32_29 = arith.constant 0 : i32
    %34 = arith.cmpi ne, %33, %c0_i32_29 : i32
    scf.if %34 {
      %cst_36 = arith.constant 0.000000e+00 : f32
      %42 = vector.broadcast %cst_36 : f32 to vector<8x32xf32>
      %c0_37 = arith.constant 0 : index
      %c0_38 = arith.constant 0 : index
      %43 = vector.load %arg9[%c0_37, %c0_38] : memref<8x32xf32, #tpu.memory_space<vmem>>, vector<8x32xf32>
      tpu.vector_store %arg9[%c0_37, %c0_38], %42 {strides = array<i32>} : memref<8x32xf32, #tpu.memory_space<vmem>>, vector<8x32xf32>,
    } else {
    }
    %c0_30 = arith.constant 0 : index
    %c0_31 = arith.constant 0 : index
    %35 = vector.load %arg9[%c0_30, %c0_31] : memref<8x32xf32, #tpu.memory_space<vmem>>, vector<8x32xf32>
    %cst_32 = arith.constant dense<0.000000e+00> : vector<8x32xf32>
    %36 = tpu.matmul %31, %11, %cst_32 {dimension_numbers = #tpu.dot_dimension_numbers<[1], [0], [0], [1], [0, 0, 1, 1], [], []>} : vector<8x8xf32>, vector<8x32xf32>, vector<8x32xf32> -> vector<8x32xf32>
    %37 = arith.addf %35, %36 : vector<8x32xf32>
    %c0_33 = arith.constant 0 : index
    %c0_34 = arith.constant 0 : index
    %38 = vector.load %arg9[%c0_33, %c0_34] : memref<8x32xf32, #tpu.memory_space<vmem>>, vector<8x32xf32>
    tpu.vector_store %arg9[%c0_33, %c0_34], %37 {strides = array<i32>} : memref<8x32xf32, #tpu.memory_space<vmem>>, vector<8x32xf32>,
    %c3_i32 = arith.constant 3 : i32
    %39 = arith.cmpi eq, %arg2, %c3_i32 : i32
    %40 = arith.extui %39 : i1 to i32
    %c0_i32_35 = arith.constant 0 : i32
    %41 = arith.cmpi ne, %40, %c0_i32_35 : i32
    scf.if %41 {
      %c0_36 = arith.constant 0 : index
      %c0_37 = arith.constant 0 : index
      %42 = vector.load %arg9[%c0_36, %c0_37] : memref<8x32xf32, #tpu.memory_space<vmem>>, vector<8x32xf32>
      %c0_38 = arith.constant 0 : index
      %c0_39 = arith.constant 0 : index
      %c0_40 = arith.constant 0 : index
      %43 = vector.load %arg7[%c0_38, %c0_39, %c0_40] : memref<1x8x32xf32, #tpu.memory_space<vmem>>, vector<1x8x32xf32>
      %44 = vector.shape_cast %43 : vector<1x8x32xf32> to vector<8x32xf32>
      %45 = vector.shape_cast %42 : vector<8x32xf32> to vector<1x8x32xf32>
      tpu.vector_store %arg7[%c0_38, %c0_39, %c0_40], %45 {strides = array<i32>} : memref<1x8x32xf32, #tpu.memory_space<vmem>>, vector<1x8x32xf32>,
    } else {
    }
    return
  }
  func.func @transform_0(%arg0: i32, %arg1: i32, %arg2: i32) -> (i32, i32, i32) {
    %c0_i32 = arith.constant 0 : i32
    %c0_i32_0 = arith.constant 0 : i32
    return %arg0, %arg1, %c0_i32 : i32, i32, i32
  }
  func.func @transform_1(%arg0: i32, %arg1: i32, %arg2: i32) -> (i32, i32, i32) {
    %c0_i32 = arith.constant 0 : i32
    %c0_i32_0 = arith.constant 0 : i32
    %c0_i32_1 = arith.constant 0 : i32
    return %arg0, %c0_i32, %c0_i32_0 : i32, i32, i32
  }
  func.func @transform_2(%arg0: i32, %arg1: i32, %arg2: i32) -> (i32, i32, i32, i32) {
    %c0_i32 = arith.constant 0 : i32
    %c0_i32_0 = arith.constant 0 : i32
    %c0_i32_1 = arith.constant 0 : i32
    %c0_i32_2 = arith.constant 0 : i32
    return %arg2, %c0_i32, %c0_i32_0, %c0_i32_1 : i32, i32, i32, i32
  }
  func.func @transform_3(%arg0: i32, %arg1: i32, %arg2: i32) -> (i32, i32, i32) {
    %c0_i32 = arith.constant 0 : i32
    %c0_i32_0 = arith.constant 0 : i32
    %c0_i32_1 = arith.constant 0 : i32
    return %arg2, %c0_i32, %c0_i32_0 : i32, i32, i32
  }
  func.func @transform_4(%arg0: i32, %arg1: i32, %arg2: i32) -> (i32, i32, i32) {
    %c0_i32 = arith.constant 0 : i32
    %c0_i32_0 = arith.constant 0 : i32
    return %arg0, %arg1, %c0_i32 : i32, i32, i32
  }
  func.func @transform_5(%arg0: i32, %arg1: i32, %arg2: i32) -> (i32, i32, i32, i32) {
    %c0_i32 = arith.constant 0 : i32
    %c0_i32_0 = arith.constant 0 : i32
    return %arg0, %arg2, %arg1, %c0_i32 : i32, i32, i32, i32
  }
}

</mosaic_0001>

<bundles_post_ra>
// kernel: tpu_custom_call.1
= control target key start
LH: loop header
LB: loop body
LE: loop exit
PB: predicated region body
PF: predicated region fallthrough
CT: control target
= control target key end

     0   :  { %s2094_s0 = inlined_call_operand.hbm [shape: f32[2,8,32], index: 0, kind: input, shape index: {}]   ;;  %s2095_s1 = inlined_call_operand.hbm [shape: f32[2,8,32], index: 1, kind: input, shape index: {}]   ;;  %s2096_s2 = inlined_call_operand.hbm [shape: f32[4,3,8,32], index: 2, kind: input, shape index: {}]   ;;  %s2097_s3 = inlined_call_operand.hbm [shape: f32[4,8,32], index: 3, kind: input, shape index: {}]   ;;  %s2098_s4 = inlined_call_operand.hbm [shape: f32[2,8,32], index: 4, kind: output, shape index: {0}]   ;;  %s2099_s5 = inlined_call_operand.hbm [shape: f32[2,4,8,8], index: 5, kind: output, shape index: {1}]  }
   0x1   :  { %2119 = sst [smem:[#allocation35_spill]] %s2094_s0 }
   0x2   :  { %2120 = sst [smem:[#allocation36_spill]] %s2095_s1 }
   0x3   :  { %2121 = sst [smem:[#allocation37_spill]] %s2098_s4 }
   0x4   :  { %2122 = sst [smem:[#allocation38_spill]] %s2099_s5 }
   0x5   :  { %11 = vsyncpa [#allocation4], 0 }
   0x6   :  { %13 = vsyncpa [#allocation4 + $0x1], 0 }
   0x7   :  { %14 = vsyncpa [#allocation7], 0 }
   0x8   :  { %16 = vsyncpa [#allocation7 + $0x1], 0 }
   0x9   :  { %17 = vsyncpa [#allocation10], 0 }
   0xa   :  { %19 = vsyncpa [#allocation10 + $0x1], 0 }
   0xb   :  { %20 = vsyncpa [#allocation5], 0 }
   0xc   :  { %22 = vsyncpa [#allocation5 + $0x1], 0 }
   0xd   :  { %23 = vsyncpa [#allocation13], 0 }
   0xe   :  { %25 = vsyncpa [#allocation13 + $0x1], 0  ;;  %s1676_s18 = smov 0   ;;  %s1678_s19 = smov 0  }
   0xf   :  { %s1680_s20 = smov 0   ;;  %s1682_s21 = smov 0  }
  0x10   :  { %s1684_s22 = smov 0   ;;  %s1686_s23 = smov 0  }
  0x11   :  { %s1688_s24 = smov 0   ;;  %s1690_s25 = smov 0  }
  0x12   :  { %s1692_s26 = smov 0   ;;  %s1694_s27 = smov 0  }
  0x13   :  { %s1696_s28 = smov 0   ;;  %s1698_s29 = smov 0  }
  0x14   :  { %s1700_s30 = smov 0   ;;  %s1702_s6 = smov 0  }
  0x15 LB: > { %2123 = sst [smem:[#allocation20_spill]] %s1581_s18  ;;  %s1747_s7 = sadd.s32 4294967295, %s1633_s6   ;;  %s1633_s6 = sphi %s1702_s6, %s31_s6   ;;  %s1629_s30 = sphi %s1700_s30, %s2173_s30   ;;  %s1625_s29 = sphi %s1698_s29, %s2184_s29   ;;  %s1621_s28 = sphi %s1696_s28, %s2171_s28   ;;  %s1617_s27 = sphi %s1694_s27, %s2183_s27   ;;  %s1613_s26 = sphi %s1692_s26, %s2182_s26   ;;  %s1609_s25 = sphi %s1690_s25, %s2181_s25   ;;  %s1605_s24 = sphi %s1688_s24, %s2180_s24   ;;  %s1601_s23 = sphi %s1686_s23, %s2179_s23   ;;  %s1597_s22 = sphi %s1684_s22, %s2178_s22   ;;  %s1593_s21 = sphi %s1682_s21, %s2177_s21   ;;  %s1589_s20 = sphi %s1680_s20, %s2168_s20   ;;  %s1585_s19 = sphi %s1678_s19, %s2176_s19   ;;  %s1581_s18 = sphi %s1676_s18, %s2175_s18  }
  0x16   : > { %2124 = sst [smem:[#allocation21_spill]] %s1589_s20  ;;  %s1098_s8 = sadd.s32 4294967294, %s1633_s6  }
  0x17   : > { %2125 = sst [smem:[#allocation22_spill]] %s1605_s24  ;;  %s43_s9 = sadd.s32 1, %s1625_s29 }
  0x18   : > { %2126 = sst [smem:[#allocation23_spill]] %s1621_s28  ;;  %s50_s10 = sadd.s32 1, %s1629_s30 }
  0x19   : > { %2127 = sst [smem:[#allocation24_spill]] %s1629_s30  ;;  %p44_p0 = scmp.ge.s32.totalorder %s43_s9, 4 }
  0x1a   : > { %2128 = sst [smem:[#allocation25_spill]] %s1633_s6  ;;  %s59_s11 = sadd.s32 1, %s1613_s26 }
  0x1b   : > { %p66_p1 = scmp.ne.s32.totalorder %s1613_s26, %s1609_s25  ;;  %p67_p2 = scmp.eq.s32.totalorder %s1633_s6, 0 }
  0x1c   : > { %s2186_s9 = smov (%p44_p0, %s43_s9), 0  ;;  %s2188_s10 = smov (!%p44_p0, %s50_s10), %s1629_s30 }
  0x1d   : > { %2129 = sst [smem:[#allocation26_spill]] %s2186_s9  ;;  %p1764_p3 = por %p67_p2, %p66_p1 }
  0x1e   : > { %p72_p4 = scmp.ne.s32.totalorder %s1609_s25, %s1605_s24  ;;  %p52_p5 = scmp.ge.s32.totalorder %s2188_s10, 2 }
  0x1f   : > { %p73_p6 = scmp.eq.s32.totalorder %s1747_s7, 0  ;;  %s108_s13 = ssub.s32 %s1625_s29, %s2186_s9 }
  0x20   : > { %s111_s14 = sadd.s32 1, %s1601_s23  ;;  %s2190_s10 = smov (%p52_p5, %s2188_s10), 0 }
  0x21   : > { %2131 = sst [smem:[#allocation27_spill]] %s2190_s10  ;;  %p1781_p7 = por %p73_p6, %p72_p4 }
  0x22   : > { %p109_p8 = scmp.eq.s32.totalorder %s108_s13, 0  ;;  %s54_s16 = ssub.s32 %s1629_s30, %s2190_s10 }
  0x23   : > { %p118_p9 = scmp.ne.s32.totalorder %s1601_s23, %s1597_s22  ;;  %p57_p10 = scmp.eq.s32.totalorder %s54_s16, 0 }
  0x24   : > { %p124_p11 = scmp.ne.s32.totalorder %s1597_s22, %s1593_s21  ;;  %p176_p0 = scmp.eq.s32.totalorder %s1747_s7, 7 }
  0x25   : > { %s1792_s17 = scalar_select %p109_p8, %s1601_s23, %s111_s14  }
  0x26   : > { %s1795_s9 = scalar_select %p57_p10, %s1613_s26, %s59_s11  }
  0x27   : > { %2133 = sst [smem:[#allocation28_spill]] %s1792_s17  ;;  %p1799_p12 = por %p118_p9, %p67_p2 }
  0x28   : > { %2134 = sst [smem:[#allocation29_spill]] %s1795_s9  ;;  %p1805_p13 = por %p124_p11, %p73_p6 }
  0x29   : > { %p182_p5 = scmp.eq.s32.totalorder %s1098_s8, 7  ;;  %s190_s21 = sor.u32 %s108_s13, %s54_s16 }
  0x2a   : > { %s195_s11 = sadd.s32 1, %s1589_s20  ;;  %p1814_p8 = por %p176_p0, %p66_p1 }
  0x2b   : > { %p1821_p2 = por %p182_p5, %p72_p4  ;;  %p193_p6 = scmp.eq.s32.totalorder %s190_s21, 0 }
  0x2c   : > { %s2137_s14 = scalar_select %p1814_p8, 1, 0 }
  0x2d   : > { %s2139_s9 = scalar_select %p1821_p2, 1, 0 }
  0x2e   : > { %2138 = sst [smem:[#allocation30_spill]] %s2137_s14  ;;  %p205_p9 = scmp.ne.s32.totalorder %s1589_s20, %s1585_s19 }
  0x2f   : > { %2140 = sst [smem:[#allocation31_spill]] %s2139_s9  ;;  %p211_p10 = scmp.ne.s32.totalorder %s1585_s19, %s1581_s18 }
  0x30   : > { %s1830_s17 = scalar_select %p193_p6, %s1589_s20, %s195_s11  }
  0x31   : > { %p1832_p11 = por %p205_p9, %p176_p0  ;;  %p1836_p1 = por %p211_p10, %p182_p5 }
  0x32   : > { %2141 = sst [smem:[#allocation32_spill]] %s1830_s17  ;;  %p1212_p8 = scmp.lt.s32.totalorder %s1633_s6, 8 }
  0x33   : > { %s2142_s8 = scalar_select %p1832_p11, 1, 0 }
  0x34   : > { %s2144_s13 = scalar_select %p1836_p1, 1, 0 }
  0x35   : > { %2143 = sst [smem:[#allocation33_spill]] %s2142_s8  ;;  %s2111_s16 = sand.u32 1, %s1613_s26  }
  0x36   : > { %2145 = sst [smem:[#allocation34_spill]] %s2144_s13  ;;  %s1844_s24 = sshll.u32 %s2111_s16, 3 }
  0x37   : > { %s1102_s21 = sshll.u32 %s1629_s30, 7  ;;  %p1849_p4 = pnand %p1212_p8, %p1764_p3 }
  0x38   : > { %s251_s11 = sand.u32 1, %s1633_s6   ;;  %s2147_s1 = sld [smem:[#allocation36_spill]] }
  0x39   : > { %s255_s13 = scalar_lea.vmem [#allocation6], %s1844_s24  ;;  %p1860_p0 = pnand %p1212_p8, %p1799_p12 }
  0x3a   : > { %s262_s8 = sshll.u32 %s255_s13, 4  ;;  %p1108_p5 = scmp.ge.s32.totalorder %s1633_s6, 1  ;;  %s263_s8 = int_to_ptr.vmem [resolvable:$true] %s262_s8 }
  0x3b   : > { %s1865_s12 = scalar_lea.sflag [#allocation7], %s251_s11  ;;  %p1337_p3 = pneg %p1849_p4 }
  0x3c   : > { %s1348_s30 = scalar_lea.vmem %s263_s8, 128  ;;  %s1635_s20 = smov [#allocation6]  }
  0x3d   : > { %p1349_p6 = scmp.ne.s32.totalorder %s263_s8, %s1348_s30  ;;  %s1353_s17 = sshll.u32 %s1635_s20, 4  ;;  %s1354_s17 = int_to_ptr.vmem [resolvable:$false] %s1353_s17 }
  0x3e   : > { %s260_s9 = scalar_lea.hbm %s2147_s1, %s1102_s21  ;;  %s1355_s5 = scalar_lea.vmem %s1354_s17, 256 }
  0x3f   : > { %p1351_p9 = pnand %p1349_p6, %p1337_p3  ;;  %p1356_p12 = scmp.lt.s32.totalorder %s263_s8, %s1354_s17 }
  0x40   : > { %p1357_p8 = scmp.lt.s32.totalorder %s1355_s5, %s1348_s30 }
  0x41   : > { %p1352_p10 = pneg %p1351_p9 }
  0x42   : > { %p1358_p1 = por %p1357_p8, %p1356_p12 }
  0x44   : > { %p1359_p2 = pnand %p1358_p1, %p1352_p10 }
  0x46   : > { %1362 = shalt.err (!%p1359_p2)
}
  0x47   : > { %1198 = dma.hbm_to_vmem [thread:$0]  (!%p1849_p4), %s260_s9, 128, %s263_s8, %s1865_s12  }
  0x48   : > { %p306_p6 = scmp.lt.s32.totalorder %s1633_s6, 9  ;;  %s2150_s0 = sld [smem:[#allocation35_spill]] }
  0x49   : > { %s236_s17 = scalar_lea.vmem [#allocation3], %s1844_s24  ;;  %s1887_s1 = sand.u32 1, %s1601_s23  }
  0x4a   : > { %p1878_p9 = pnand %p1108_p5, %p306_p6  ;;  %s244_s5 = sshll.u32 %s236_s17, 4  ;;  %s245_s5 = int_to_ptr.vmem [resolvable:$true] %s244_s5 }
  0x4b   : > { %s1177_s4 = smul.u32 24, %s1887_s1  ;;  %s2151_s14 = sand.u32 1, %s1613_s26  }
  0x4c   : > { %s233_s28 = scalar_lea.sflag [#allocation4], %s2151_s14  ;;  %s1376_s9 = scalar_lea.vmem %s245_s5, 128 }
  0x4d   : > { %p1377_p2 = scmp.ne.s32.totalorder %s245_s5, %s1376_s9  ;;  %s1636_s8 = smov [#allocation3]  }
  0x4e   : > { %s242_s20 = scalar_lea.hbm %s2150_s0, %s1102_s21  ;;  %s1381_s6 = sshll.u32 %s1636_s8, 4  ;;  %s1382_s6 = int_to_ptr.vmem [resolvable:$false] %s1381_s6 }
  0x4f   : > { %p1379_p1 = pnand %p1377_p2, %p1337_p3  ;;  %s1383_s30 = scalar_lea.vmem %s1382_s6, 256 }
  0x50   : > { %p1384_p10 = scmp.lt.s32.totalorder %s245_s5, %s1382_s6  ;;  %p1385_p12 = scmp.lt.s32.totalorder %s1383_s30, %s1376_s9 }
  0x51   : > { %p1380_p5 = pneg %p1379_p1 }
  0x52   : > { %p1386_p8 = por %p1385_p12, %p1384_p10 }
  0x54   : > { %p1387_p6 = pnand %p1386_p8, %p1380_p5 }
  0x56   : > { %1390 = shalt.err (!%p1387_p6)
}
  0x57   : > { %1195 = dma.hbm_to_vmem [thread:$0]  (!%p1849_p4), %s242_s20, 128, %s245_s5, %s233_s28  }
  0x58   : > { %s1178_s24 = smul.u32 384, %s1625_s29  ;;  %s273_s14 = scalar_lea.vmem [#allocation8], %s1177_s4 }
  0x59   : > { %s280_s21 = sshll.u32 %s273_s14, 4  ;;  %p1393_p3 = pneg %p1860_p0  ;;  %s281_s21 = int_to_ptr.vmem [resolvable:$true] %s280_s21 }
  0x5a   : > { %s279_s8 = scalar_lea.hbm %s2096_s2, %s1178_s24  ;;  %s1404_s6 = scalar_lea.vmem %s281_s21, 384 }
  0x5b   : > { %p1405_p2 = scmp.ne.s32.totalorder %s281_s21, %s1404_s6  ;;  %s1637_s18 = smov [#allocation8]  }
  0x5c   : > { %s1409_s9 = sshll.u32 %s1637_s18, 4  ;;  %s1410_s9 = int_to_ptr.vmem [resolvable:$false] %s1409_s9 }
  0x5d   : > { %p1407_p1 = pnand %p1405_p2, %p1393_p3  ;;  %s1411_s28 = scalar_lea.vmem %s1410_s9, 768 }
  0x5e   : > { %p1412_p4 = scmp.lt.s32.totalorder %s281_s21, %s1410_s9  ;;  %p1413_p10 = scmp.lt.s32.totalorder %s1411_s28, %s1404_s6 }
  0x5f   : > { %p1408_p5 = pneg %p1407_p1 }
  0x60   : > { %p1414_p12 = por %p1413_p10, %p1412_p4 }
  0x62   : > { %p1415_p8 = pnand %p1414_p12, %p1408_p5 }
  0x64   : > { %1418 = shalt.err (!%p1415_p8)
}
  0x65   : > { %s1638_s4 = smov 128   ;;  %s1639_s20 = smov 8  }
  0x66   : > { %1201 = dma.hbm_to_vmem [thread:$0]  (!%p1860_p0), %s279_s8, 384, %s281_s21, %s1865_s12, %s1638_s4, %s1638_s4, %s1639_s20  }
  0x67   : > { %s1106_s5 = sshll.u32 %s1887_s1, 3  ;;  %s1107_s30 = sshll.u32 %s1625_s29, 7 }
  0x68   : > { %s299_s11 = scalar_lea.hbm %s2097_s3, %s1107_s30  ;;  %s294_s17 = scalar_lea.vmem [#allocation9], %s1106_s5 }
  0x69   : > { %s301_s6 = sshll.u32 %s294_s17, 4  ;;  %s291_s18 = scalar_lea.sflag [#allocation10], %s1887_s1  ;;  %s302_s6 = int_to_ptr.vmem [resolvable:$true] %s301_s6 }
  0x6a   : > { %s1432_s9 = scalar_lea.vmem %s302_s6, 128  ;;  %s1640_s28 = smov [#allocation9]  }
  0x6b   : > { %p1433_p6 = scmp.ne.s32.totalorder %s302_s6, %s1432_s9  ;;  %s1437_s0 = sshll.u32 %s1640_s28, 4  ;;  %s1438_s0 = int_to_ptr.vmem [resolvable:$false] %s1437_s0 }
  0x6c   : > { %s1439_s12 = scalar_lea.vmem %s1438_s0, 256  ;;  %p1440_p5 = scmp.lt.s32.totalorder %s302_s6, %s1438_s0 }
  0x6d   : > { %p1435_p2 = pnand %p1433_p6, %p1393_p3  ;;  %p1441_p4 = scmp.lt.s32.totalorder %s1439_s12, %s1432_s9 }
  0x6f   : > { %p1436_p1 = pneg %p1435_p2  ;;  %p1442_p10 = por %p1441_p4, %p1440_p5 }
  0x71   : > { %p1443_p12 = pnand %p1442_p10, %p1436_p1 }
  0x73   : > { %1446 = shalt.err (!%p1443_p12)
}
  0x74   : > { %1204 = dma.hbm_to_vmem [thread:$0]  (!%p1860_p0), %s299_s11, 128, %s302_s6, %s291_s18  }
  0x75   : > { %310 = sbr.rel (%p1878_p9) target bundleno = 1297 (0x511), region = 36  ;;  %s1923_s1 = sand.u32 (!%p1878_p9), 1, %s1609_s25  }
  0x76   : > { %s1926_s21 = sshll.u32 (!%p1878_p9), %s1923_s1, 3  ;;  %s313_s0 = scalar_lea.sflag (!%p1878_p9), [#allocation4], %s1923_s1 }
  0x77   : > { %s316_s8 = scalar_lea.vmem (!%p1878_p9), [#allocation3], %s1926_s21 }
  0x7a   : > { %1556 = dma.done.wait (%p1781_p7), %s313_s0, 128  }
  0x7b   : > { %1558 = vsyncadd (%p1781_p7), %s313_s0, 4294967168  ;;  %s321_s16 = sand.u32 1, %s1747_s7   ;;  %s325_s4 = scalar_lea.vmem [#allocation6], %s1926_s21 }
  0x7c   : > { %s322_s13 = scalar_lea.sflag [#allocation7], %s321_s16 }
  0x7d   : > { %1560 = dma.done.wait (%p1781_p7), %s322_s13, 128  }
  0x7e   : > { %1562 = vsyncadd (%p1781_p7), %s322_s13, 4294967168  ;;  %s332_s20 = sand.u32 1, %s1597_s22  }
  0x7f   : > { %s1179_s5 = smul.u32 24, %s332_s20 }
  0x81   : > { %s1941_s30 = scalar_lea.vmem [#allocation8], %s1179_s5 }
  0x82   : > { %1564 = dma.done.wait (%p1805_p13), %s322_s13, 384  }
  0x83   : > { %1566 = vsyncadd (%p1805_p13), %s322_s13, 4294966912  ;;  %s1111_s7 = sshll.u32 %s332_s20, 3  ;;  %s340_s24 = scalar_lea.sflag [#allocation10], %s332_s20 }
  0x84   : > { %s343_s14 = scalar_lea.vmem [#allocation9], %s1111_s7 }
  0x85   : > { %1568 = dma.done.wait (%p1805_p13), %s340_s24, 128  }
  0x86   : > { %1570 = vsyncadd (%p1805_p13), %s340_s24, 4294967168  ;;  %v1641_v0 = vmov 0.0   ;;  %vm1642_vm0 = vmmov 0   ;;  %vm398_vm1 = vcmask 261120   ;;  %v397_v1 = vld [vmem:[%s343_s14] sm:$0xff]  ;;  %v1114_v2 = vld [vmem:[%s1941_s30 + $0x8] sm:$0xff] }
  0x87   : > { %1152 = vmatprep.subr.mxu1 %v1641_v0  ;;  %1147 = vmatprep.subr.mxu0 %v1641_v0  ;;  %v392_v3 = vld [vmem:[%s1941_s30] sm:$0xff]  ;;  %vm624_vm2 = vcmask 64512   ;;  %v1115_v10 = vld [vmem:[%s1941_s30 + $0x10] sm:$0xff]  ;;  %s387_s10 = sand.u32 1, %s1585_s19   ;;  %s382_s17 = scalar_lea.vmem [#allocation11], %s1926_s21 }
  0x88   : > { %1154 = vmatprep.mubr.msk.f32.mxu1 %vm1642_vm0, %v1641_v0  ;;  %1149 = vmatprep.mubr.msk.f32.mxu0 %vm1642_vm0, %v1641_v0  ;;  %v391_v4 = vld [vmem:[%s325_s4] sm:$0xff]  ;;  %v390_v5 = vld [vmem:[%s316_s8] sm:$0xff]  ;;  %s1984_s15 = sshll.u32 %s387_s10, 3  ;;  %p1125_p7 = scmp.ne.s32.totalorder %s1617_s27, 0 }
  0x89   : > { %1153 = vmatpush3.xpose.msk.msra.mxu1 %vm398_vm1, %v1114_v2  ;;  %1148 = vmatpush3.xpose.msk.msra.mxu0 %vm398_vm1, %v392_v3  ;;  %s389_s11 = scalar_lea.vmem [#allocation12], %s1984_s15 }
  0x8a   : > { %1162 = vmatprep.subr.mxu1 %v1641_v0  ;;  %1157 = vmatprep.subr.mxu0 %v1641_v0 }
  0x8c   : > { %1155 = vmatmul.mubr.msk.f32.vlgmr.msra.gmra.mxu1 %vm398_vm1, %v391_v4  ;;  %1150 = vmatmul.mubr.msk.f32.vlgmr.msra.gmra.mxu0 %vm398_vm1, %v390_v5 }
  0x8d   : > { %1164 = vmatprep.mubr.msk.f32.mxu1 %vm1642_vm0, %v1641_v0  ;;  %1159 = vmatprep.mubr.msk.f32.mxu0 %vm1642_vm0, %v1641_v0 }
  0x8e   : > { %1158 = vmatpush3.xpose.msk.msra.mxu0 %vm398_vm1, %v1115_v10 }
  0x8f   : > { %1167 = vmatprep.subr.mxu0 %v1641_v0 }
  0x91   : > { %1160 = vmatmul.mubr.msk.f32.vlgmr.msra.gmra.mxu0 %vm398_vm1, %v391_v4 }
  0x92   : > { %1169 = vmatprep.mubr.msk.f32.mxu0 %vm1642_vm0, %v1641_v0 }
 0x14c   : > { %v547_v6 = vpop.f32.mrf.mxu1  ;;  %v471_v7 = vpop.f32.mrf.mxu0 }
 0x14d   : > { %1163 = vmatpush3.xpose.msk.msra.mxu1 %vm624_vm2, %v547_v6 }
 0x14e   : > { %v1156_v8 = vpop.f32.mrf.mxu1  ;;  %v1151_v9 = vpop.f32.mrf.mxu0 }
 0x150   : > { %1165 = vmatmul.mubr.msk.f32.vlgmr.msra.gmra.mxu1 %vm624_vm2, %v471_v7 }
 0x151   : > { %v620_v20 = vpop.f32.mrf.mxu0 }
 0x152   : > { %1168 = vmatpush3.msra.mxu0 %v620_v20 }
 0x153   : > { %v1161_v21 = vpop.f32.mrf.mxu0 }
 0x210   : > { %v697_v11 = vpop.f32.mrf.mxu1 }
 0x211   : > { %v701_v12 = vmul.f32 0.35355338, %v697_v11 }
 0x212   : > { %v1166_v13 = vpop.f32.mrf.mxu1 }
 0x213   : > { %v702_v14 = vsel %vm624_vm2, %v701_v12, -inf }
 0x214   : > { %703 = vmax.xlane.f32.xlu0 %v702_v14 }
 0x29d   : > { %v704_v15 = vpop.xlane.xlu0 %703 }
 0x29e   : > { %v705_v16 = vsub.f32 %v701_v12, %v704_v15 }
 0x2a0   : > { %v706_v17 = vmul.f32 1.442695, %v705_v16 }
 0x2a2   : > { %1331 = vpow2.f32 %v706_v17 }
 0x2af   : > { %v1332_v18 = vpop.eup %1331 }
 0x2b0   : > { %v708_v19 = vsel %vm624_vm2, %v1332_v18, 0.0 }
 0x2b1   : > { %709 = vadd.xlane.f32.xlu0 %v708_v19 }
 0x33a   : > { %v710_v22 = vpop.xlane.xlu0 %709 }
 0x33b   : > { %1333 = vrcp.f32 %v710_v22 }
 0x348   : > { %v1334_v23 = vpop.eup %1333 }
 0x349   : > { %v712_v24 = vmul.f32 %v1334_v23, %v1332_v18 }
 0x34b   : > { %713 = vst.msk [vmem:[%s389_s11] sm:$0xff] %vm624_vm2, %v712_v24  ;;  %1170 = vmatmul.mubr.msk.f32.vlgmr.msra.gmra.mxu0 %vm624_vm2, %v712_v24 }
 0x409   : > { %790 = sbr.rel (%p1125_p7) target bundleno = 1040 (0x410), region = 56 }
 0x40b   : > { %v783_v25 = vpop.f32.mrf.mxu0 }
 0x40d   : > { %v1171_v26 = vpop.f32.mrf.mxu0 }
 0x40e   : > { %v1643_v27 = vmov 0.0  }
 0x40f   : > { %791 = vst.msk [vmem:[#allocation2] sm:$0xff] %vm398_vm1, %v1643_v27 }
 0x410 PF: > { %1172 = vmatprep.subr.mxu1 %v1641_v0  ;;  %1174 = vmatprep.mubr.msk.f32.mxu1 %vm1642_vm0, %v1641_v0  ;;  %p1127_p13 = scmp.ne.s32.totalorder %s1617_s27, 3 }
 0x411   : > { %1173 = vmatpush3.msra.mxu1 %v397_v1 }
 0x412   : > { %1175 = vmatmul.mubr.msk.f32.vlgmr.msra.gmra.mxu1 %vm624_vm2, %v783_v25 }
 0x416   : > { %v792_v28 = vld [vmem:[#allocation2] sm:$0xff] }
 0x4d1   : > { %871 = sbr.rel (%p1127_p13) target bundleno = 1246 (0x4de), region = 60 }
 0x4d2   : > { %v862_v29 = vpop.f32.mrf.mxu1 }
 0x4d3   : > { %v866_v30 = vadd.f32 %v862_v29, %v792_v28 }
 0x4d4   : > { %v1176_v31 = vpop.f32.mrf.mxu1 }
 0x4d5   : > { %867 = vst.msk [vmem:[#allocation2] sm:$0xff] %vm398_vm1, %v866_v30 }
 0x4dc   : > { %v872_v32 = vld [vmem:[#allocation2] sm:$0xff] }
 0x4dd   : > { %873 = vst.msk [vmem:[%s382_s17] sm:$0xff] %vm398_vm1, %v872_v32 }
 0x4de PF: > { %s2152_s6 = sld [smem:[#allocation23_spill]]  ;;  %s894_s16 = sshll.u32 %s382_s17, 4  ;;  %s895_s16 = int_to_ptr.vmem [resolvable:$true] %s894_s16 }
 0x4df   : > { %s2153_s18 = sld [smem:[#allocation30_spill]]  ;;  %s875_s13 = scalar_lea.sflag [#allocation5], %s1923_s1 }
 0x4e0   : > { %s2154_s21 = sld [smem:[#allocation37_spill]]  ;;  %s1447_s4 = scalar_lea.vmem %s895_s16, 128 }
 0x4e1   : > { %p1448_p0 = scmp.ne.s32.totalorder %s895_s16, %s1447_s4  ;;  %s1644_s20 = smov [#allocation11]  }
 0x4e2   : > { %s1451_s5 = sshll.u32 %s1644_s20, 4  ;;  %s1452_s5 = int_to_ptr.vmem [resolvable:$false] %s1451_s5 }
 0x4e3   : > { %s1453_s30 = scalar_lea.vmem %s1452_s5, 256  ;;  %p1454_p6 = scmp.lt.s32.totalorder %s895_s16, %s1452_s5 }
 0x4e4   : > { %s1130_s9 = sshll.u32 %s2152_s6, 7  ;;  %p1455_p2 = scmp.lt.s32.totalorder %s1453_s30, %s1447_s4 }
 0x4e5   : > { %p2156_p9 = scmp.ne.s32.totalorder %s2153_s18, 0 }
 0x4e6   : > { %s2155_s0 = smov %s2154_s21  ;;  %s892_s8 = scalar_lea.hbm %s2154_s21, %s1130_s9 }
 0x4e7   : > { %p1449_p3 = pnand %p1448_p0, %p2156_p9  ;;  %p1456_p1 = por %p1455_p2, %p1454_p6 }
 0x4e9   : > { %p1450_p8 = pneg %p1449_p3 }
 0x4eb   : > { %p1457_p5 = pnand %p1456_p1, %p1450_p8 }
 0x4ed   : > { %1460 = shalt.err (!%p1457_p5)
}
 0x4ee   : > { %s1461_s7 = scalar_lea.hbm %s892_s8, 128  ;;  %s1465_s14 = scalar_lea.hbm %s2155_s0, 256 }
 0x4ef   : > { %p1462_p4 = scmp.ne.s32.totalorder %s892_s8, %s1461_s7  ;;  %p1466_p7 = scmp.lt.s32.totalorder %s892_s8, %s2155_s0 }
 0x4f0   : > { %p1467_p13 = scmp.lt.s32.totalorder %s1465_s14, %s1461_s7 }
 0x4f1   : > { %p1463_p10 = pnand %p1462_p4, %p2156_p9 }
 0x4f2   : > { %p1468_p0 = por %p1467_p13, %p1466_p7 }
 0x4f3   : > { %p1464_p12 = pneg %p1463_p10 }
 0x4f5   : > { %p1469_p3 = pnand %p1468_p0, %p1464_p12 }
 0x4f7   : > { %1472 = shalt.err (!%p1469_p3)
}
 0x4f8   : > { %1188 = dma.vmem_to_hbm [thread:$0]  (%p2156_p9), %s895_s16, 128, %s892_s8, %s875_s13  }
 0x4f9   : > { %s1131_s12 = sshll.u32 %s2152_s6, 2  ;;  %s910_s21 = sshll.u32 %s389_s11, 4  ;;  %s911_s21 = int_to_ptr.vmem [resolvable:$true] %s910_s21 }
 0x4fa   : > { %s906_s4 = sadd.s32 %s1617_s27, %s1131_s12  ;;  %s2158_s7 = sld [smem:[#allocation38_spill]] }
 0x4fb   : > { %s1132_s20 = sshll.u32 %s906_s4, 7  ;;  %s880_s24 = scalar_lea.sflag [#allocation13], %s387_s10 }
 0x4fc   : > { %s1473_s14 = scalar_lea.vmem %s911_s21, 128  ;;  %s1645_s18 = smov [#allocation12]  }
 0x4fd   : > { %p1474_p8 = scmp.ne.s32.totalorder %s911_s21, %s1473_s14  ;;  %s1477_s17 = sshll.u32 %s1645_s18, 4  ;;  %s1478_s17 = int_to_ptr.vmem [resolvable:$false] %s1477_s17 }
 0x4fe   : > { %s1479_s6 = scalar_lea.vmem %s1478_s17, 256  ;;  %p1480_p9 = scmp.lt.s32.totalorder %s911_s21, %s1478_s17 }
 0x4ff   : > { %p1475_p6 = pnand %p1474_p8, %p1832_p11  ;;  %p1481_p1 = scmp.lt.s32.totalorder %s1479_s6, %s1473_s14 }
 0x500   : > { %s908_s1 = scalar_lea.hbm %s2158_s7, %s1132_s20 }
 0x501   : > { %p1476_p2 = pneg %p1475_p6  ;;  %p1482_p5 = por %p1481_p1, %p1480_p9 }
 0x503   : > { %p1483_p4 = pnand %p1482_p5, %p1476_p2 }
 0x505   : > { %1486 = shalt.err (!%p1483_p4)
}
 0x506   : > { %s1487_s27 = scalar_lea.hbm %s908_s1, 128  ;;  %s1491_s11 = scalar_lea.hbm %s2158_s7, 1024 }
 0x507   : > { %p1488_p10 = scmp.ne.s32.totalorder %s908_s1, %s1487_s27  ;;  %p1492_p13 = scmp.lt.s32.totalorder %s908_s1, %s2158_s7 }
 0x508   : > { %p1493_p0 = scmp.lt.s32.totalorder %s1491_s11, %s1487_s27 }
 0x509   : > { %p1489_p12 = pnand %p1488_p10, %p1832_p11 }
 0x50a   : > { %p1494_p3 = por %p1493_p0, %p1492_p13 }
 0x50b   : > { %p1490_p7 = pneg %p1489_p12 }
 0x50d   : > { %p1495_p8 = pnand %p1494_p3, %p1490_p7 }
 0x50f   : > { %1498 = shalt.err (!%p1495_p8)
}
 0x510   : > { %1189 = dma.vmem_to_hbm [thread:$0]  (%p1832_p11), %s911_s21, 128, %s908_s1, %s880_s24  }
 0x511 PF: > { %s2159_s13 = sld [smem:[#allocation25_spill]] }
 0x512   : > { %s2160_s9 = sld [smem:[#allocation22_spill]] }
 0x513   : > { %s2161_s12 = sld [smem:[#allocation31_spill]] }
 0x517   : > { %p1213_p6 = scmp.ge.s32.totalorder %s2159_s13, 2 }
 0x518   : > { %s922_s4 = sand.u32 1, %s2160_s9  }
 0x519   : > { %p2162_p2 = scmp.ne.s32.totalorder %s2161_s12, 0  ;;  %s923_s20 = scalar_lea.sflag [#allocation5], %s922_s4 }
 0x51b   : > { %p1206_p9 = pnand %p1213_p6, %p2162_p2 }
 0x51d   : > { %p1207_p1 = pneg %p1206_p9 }
 0x51f   : > { %1572 = dma.done.wait (%p1207_p1), %s923_s20, 128  }
 0x520   : > { %1574 = vsyncadd (%p1207_p1), %s923_s20, 4294967168  ;;  %s2163_s5 = sld [smem:[#allocation20_spill]] }
 0x521   : > { %s2164_s30 = sld [smem:[#allocation34_spill]] }
 0x526   : > { %s931_s14 = sand.u32 1, %s2163_s5  }
 0x527   : > { %p2165_p5 = scmp.ne.s32.totalorder %s2164_s30, 0  ;;  %s932_s28 = scalar_lea.sflag [#allocation13], %s931_s14 }
 0x529   : > { %p1209_p4 = pnand %p1213_p6, %p2165_p5 }
 0x52b   : > { %p1210_p10 = pneg %p1209_p4 }
 0x52d   : > { %1576 = dma.done.wait (%p1210_p10), %s932_s28, 128  }
 0x52e   : > { %1578 = vsyncadd (%p1210_p10), %s932_s28, 4294967168  ;;  %s31_s6 = sadd.s32 1, %s2159_s13   ;;  %s2167_s1 = sld [smem:[#allocation21_spill]] }
 0x52f   : > { %p2047_p11 = scmp.ge.s32.totalorder %s31_s6, 10   ;;  %s2168_s20 = sld [smem:[#allocation32_spill]] }
 0x530   : > { %s2169_s24 = sld [smem:[#allocation28_spill]]  ;;  %s2175_s18 = smov %s1585_s19 }
 0x531   : > { %s2170_s17 = sld [smem:[#allocation29_spill]]  ;;  %s2177_s21 = smov %s1597_s22 }
 0x532   : > { %s2171_s28 = sld [smem:[#allocation24_spill]]  ;;  %s2178_s22 = smov %s1601_s23 }
 0x533   : > { %s2172_s10 = sld [smem:[#allocation26_spill]]  ;;  %s2183_s27 = smov %s1625_s29 }
 0x534   : > { %s2173_s30 = sld [smem:[#allocation27_spill]]  ;;  %s2176_s19 = smov %s2167_s1 }
 0x535   :  { %30 = sbr.rel (!%p2047_p11) target bundleno = 21 (0x15), region = 145 }
 0x536   : > { %s2179_s23 = smov %s2169_s24  ;;  %s2180_s24 = smov %s1609_s25 }
 0x537   : > { %s2181_s25 = smov %s1613_s26  ;;  %s2182_s26 = smov %s2170_s17 }
 0x539   : > { %s2184_s29 = smov %s2172_s10 }
 0x53a   :  { %937 = vsyncpa [#allocation4], 1 }
 0x53b   :  { %939 = vsyncpa [#allocation4 + $0x1], 1 }
 0x53c   :  { %940 = vsyncpa [#allocation7], 1 }
 0x53d   :  { %942 = vsyncpa [#allocation7 + $0x1], 1 }
 0x53e   :  { %943 = vsyncpa [#allocation10], 1 }
 0x53f   :  { %945 = vsyncpa [#allocation10 + $0x1], 1 }
 0x540   :  { %946 = vsyncpa [#allocation5], 1 }
 0x541   :  { %948 = vsyncpa [#allocation5 + $0x1], 1 }
 0x542   :  { %949 = vsyncpa [#allocation13], 1 }
 0x543   :  { %951 = vsyncpa [#allocation13 + $0x1], 1 }

</bundles_post_ra>
